<compile_context>
chip_gen: v7x
topology: tpu7x:2x2x1
jax: 0.10.0
libtpu: 0.0.40
codegen_flags: <defaults>
</compile_context>

<pallas_src>
import jax
import jax.numpy as jnp
from jax.experimental import pallas as pl
from jax.experimental.pallas import tpu as pltpu


_MIN_STD = 1e-10
_VMEM_LIMIT_BYTES = 32 * 1024 * 1024   # explicit: v5e default scoped VMEM is only 16 MiB
_VMEM_BUDGET_BYTES = 16 * 1024 * 1024  # target for the live (double-buffered) working set


def _affine_kernel(a_ref, b_ref, x_ref, o_ref):
    # Pure VPU FMA; compute in f32 and cast on store (safe if x is bf16).
    x = x_ref[...].astype(jnp.float32)
    o_ref[...] = (x * a_ref[...] + b_ref[...]).astype(o_ref.dtype)


def _pick_row_tile(n_rows, bytes_per_row_live):
    """Largest row tile whose live VMEM working set fits the budget."""
    rows = max(1, _VMEM_BUDGET_BYTES // max(1, bytes_per_row_live))
    if rows >= n_rows:
        return int(n_rows)          # single / full-extent block along rows
    if rows >= 32:
        return int((rows // 32) * 32)  # multiple of 32: sublane-safe for f32/bf16/int8
    return 8


def _affine_2d(x2, a2, b2, coeff_per_row):
    """o = x2 * a + b.

    x2: (R, L).  Coefficients are either (R, 1) per-row (4-D path) or
    (1, L) per-lane (2-D path, resident and fetched once).
    """
    R, L = x2.shape
    isz = x2.dtype.itemsize
    # Live VMEM per tile-row: double-buffered x input + output, plus the
    # lane-padded (TR, 1) coefficient blocks when they are per-row.
    per_row = 2 * L * isz + 2 * L * isz + (4 * 512 if coeff_per_row else 0)
    tr = _pick_row_tile(R, per_row)
    nb = int(pl.cdiv(R, tr))

    if coeff_per_row:
        coeff_spec = pl.BlockSpec((tr, 1), lambda i: (i, 0))
    else:
        coeff_spec = pl.BlockSpec((1, L), lambda i: (0, 0))  # constant index -> fetched once

    return pl.pallas_call(
        _affine_kernel,
        out_shape=jax.ShapeDtypeStruct((R, L), x2.dtype),
        grid=(nb,),
        in_specs=[coeff_spec, coeff_spec,
                  pl.BlockSpec((tr, L), lambda i: (i, 0))],
        out_specs=pl.BlockSpec((tr, L), lambda i: (i, 0)),
        compiler_params=pltpu.CompilerParams(
            dimension_semantics=("parallel",),
            vmem_limit_bytes=_VMEM_LIMIT_BYTES),
    )(a2, b2, x2)


def normalization(x, mean, std, normalize: bool = True):
    """JAX/Pallas equivalent of Normalization.forward.

    mean, std: 1-D per-channel arrays of shape (C,).
    x: (N, C, H, W) or (N, C).
    """
    mean = jnp.asarray(mean, dtype=jnp.float32)
    std = jnp.asarray(std, dtype=jnp.float32)
    std = jnp.where(std <= _MIN_STD, jnp.ones_like(std), std)

    # Fold (mean, std) into an affine on the tiny (C,) arrays outside the kernel.
    if normalize:
        a = 1.0 / std
        b = -mean / std
    else:
        a = std
        b = mean

    if x.ndim == 4:
        N, C, H, W = x.shape
        R, L = N * C, H * W
        x2 = x.reshape(R, L)                 # free view of contiguous NCHW
        a2 = jnp.tile(a, N)[:, None]         # (N*C, 1) per-row coefficients
        b2 = jnp.tile(b, N)[:, None]
        out = _affine_2d(x2, a2, b2, coeff_per_row=True)
        return out.reshape(N, C, H, W)
    elif x.ndim == 2:
        # TODO(synk): for very small C the output is only C lanes wide (masked
        # stores); a lane-dense re-layout would need an extra HBM transpose and
        # only pays off for very large N.
        return _affine_2d(x, a[None, :], b[None, :], coeff_per_row=False)
    else:
        raise ValueError("data must be either 2 or 4 dimensional")


if __name__ == "__main__":
    key = jax.random.PRNGKey(0)
    k1, k2, k3, k4 = jax.random.split(key, 4)

    C = 4
    mean = jax.random.normal(k1, (C,), dtype=jnp.float32)
    std = jnp.abs(jax.random.normal(k2, (C,), dtype=jnp.float32)) + 0.1
    std = std.at[0].set(0.0)  # exercise the min_std replacement path

    # 4-D NCHW input
    x4 = jax.random.normal(k3, (2, C, 16, 16), dtype=jnp.float32)
    # 2-D input
    x2 = jax.random.normal(k4, (2, C), dtype=jnp.float32)

    std_ref = jnp.where(std <= 1e-10, 1.0, std)

    # normalize, 4-D
    y4 = jax.block_until_ready(normalization(x4, mean, std, normalize=True))
    ref4 = (x4 - mean[None, :, None, None]) / std_ref[None, :, None, None]
    assert y4.shape == x4.shape and y4.dtype == x4.dtype
    assert jnp.allclose(y4, ref4, atol=1e-5, rtol=1e-5)

    # denormalize, 4-D
    d4 = jax.block_until_ready(normalization(x4, mean, std, normalize=False))
    refd4 = x4 * std_ref[None, :, None, None] + mean[None, :, None, None]
    assert jnp.allclose(d4, refd4, atol=1e-5, rtol=1e-5)

    # normalize, 2-D
    y2 = jax.block_until_ready(normalization(x2, mean, std, normalize=True))
    ref2 = (x2 - mean[None, :]) / std_ref[None, :]
    assert y2.shape == x2.shape
    assert jnp.allclose(y2, ref2, atol=1e-5, rtol=1e-5)

    # denormalize, 2-D
    d2 = jax.block_until_ready(normalization(x2, mean, std, normalize=False))
    refd2 = x2 * std_ref[None, :] + mean[None, :]
    assert jnp.allclose(d2, refd2, atol=1e-5, rtol=1e-5)

    print("KERNEL_OK")
</pallas_src>

<mosaic_0001>
module attributes {stable_mosaic.version = 11 : i64} {
  func.func @_affine_kernel(%arg0: i32, %arg1: memref<8x1xf32, #tpu.memory_space<vmem>>, %arg2: memref<8x1xf32, #tpu.memory_space<vmem>>, %arg3: memref<8x256xf32, #tpu.memory_space<vmem>>, %arg4: memref<8x256xf32, #tpu.memory_space<vmem>>) attributes {dimension_semantics = [#tpu.dimension_semantics<parallel>], iteration_bounds = array<i64: 1>, scalar_prefetch = 0 : i64, scratch_operands = 0 : i64, tpu.core_type = #tpu.core_type<tc>, window_params = [{transform_indices = @transform_0, window_bounds = array<i64: 8, 1>}, {transform_indices = @transform_1, window_bounds = array<i64: 8, 1>}, {transform_indices = @transform_2, window_bounds = array<i64: 8, 256>}, {transform_indices = @transform_3, window_bounds = array<i64: 8, 256>}]} {
    %c0 = arith.constant 0 : index
    %c0_0 = arith.constant 0 : index
    %0 = vector.load %arg3[%c0, %c0_0] : memref<8x256xf32, #tpu.memory_space<vmem>>, vector<8x256xf32>
    %c0_1 = arith.constant 0 : index
    %c0_2 = arith.constant 0 : index
    %1 = vector.load %arg1[%c0_1, %c0_2] : memref<8x1xf32, #tpu.memory_space<vmem>>, vector<8x1xf32>
    %2 = vector.broadcast %1 : vector<8x1xf32> to vector<8x256xf32>
    %3 = arith.mulf %0, %2 : vector<8x256xf32>
    %c0_3 = arith.constant 0 : index
    %c0_4 = arith.constant 0 : index
    %4 = vector.load %arg2[%c0_3, %c0_4] : memref<8x1xf32, #tpu.memory_space<vmem>>, vector<8x1xf32>
    %5 = vector.broadcast %4 : vector<8x1xf32> to vector<8x256xf32>
    %6 = arith.addf %3, %5 : vector<8x256xf32>
    %c0_5 = arith.constant 0 : index
    %c0_6 = arith.constant 0 : index
    %7 = vector.load %arg4[%c0_5, %c0_6] : memref<8x256xf32, #tpu.memory_space<vmem>>, vector<8x256xf32>
    tpu.vector_store %arg4[%c0_5, %c0_6], %6 {strides = array<i32>} : memref<8x256xf32, #tpu.memory_space<vmem>>, vector<8x256xf32>,
    return
  }
  func.func @transform_0(%arg0: i32) -> (i32, i32) {
    %c0_i32 = arith.constant 0 : i32
    %c0_i32_0 = arith.constant 0 : i32
    return %arg0, %c0_i32 : i32, i32
  }
  func.func @transform_1(%arg0: i32) -> (i32, i32) {
    %c0_i32 = arith.constant 0 : i32
    %c0_i32_0 = arith.constant 0 : i32
    return %arg0, %c0_i32 : i32, i32
  }
  func.func @transform_2(%arg0: i32) -> (i32, i32) {
    %c0_i32 = arith.constant 0 : i32
    %c0_i32_0 = arith.constant 0 : i32
    return %arg0, %c0_i32 : i32, i32
  }
  func.func @transform_3(%arg0: i32) -> (i32, i32) {
    %c0_i32 = arith.constant 0 : i32
    %c0_i32_0 = arith.constant 0 : i32
    return %arg0, %c0_i32 : i32, i32
  }
}

</mosaic_0001>

<bundles_post_ra>
// kernel: tpu_custom_call.1
= control target key start
LH: loop header
LB: loop body
LE: loop exit
PB: predicated region body
PF: predicated region fallthrough
CT: control target
= control target key end

     0   :  { %s122_s0 = inlined_call_operand.vmem [shape: f32[8,1], index: 0, kind: input, shape index: {}]   ;;  %s123_s1 = inlined_call_operand.vmem [shape: f32[8,1], index: 1, kind: input, shape index: {}]   ;;  %s124_s2 = inlined_call_operand.vmem [shape: f32[8,256], index: 2, kind: input, shape index: {}]   ;;  %s125_s3 = inlined_call_operand.hbm [shape: f32[8,256], index: 3, kind: output, shape index: {}]  }
   0x1   :  { %v17_v0 = vld [vmem:[%s122_s0] sm:$0xff] }
   0x2   :  { %8 = vsyncpa [#allocation3], 0  ;;  %v76_v1 = vmov 0   ;;  %v25_v2 = vld [vmem:[%s123_s1] sm:$0xff]  ;;  %v16_v5 = vld [vmem:[%s124_s2 + $0x8] sm:$0xff]  ;;  %s77_s20 = smov [#allocation2]  }
   0x3   :  { %51 = vset.pattern.permute.xlu0 %v76_v1  ;;  %v15_v4 = vld [vmem:[%s124_s2] sm:$0xff]  ;;  %s41_s0 = sshll.u32 %s77_s20, 4  ;;  %s42_s0 = int_to_ptr.vmem [resolvable:$true] %s41_s0 }
   0x4   :  { %20 = vperm.xlu0 %51, %v17_v0   ;;  %s52_s1 = scalar_lea.vmem %s42_s0, 256  ;;  %p57_p1 = scmp.lt.s32.totalorder %s42_s0, %s42_s0 }
   0x5   :  { %p53_p0 = scmp.ne.s32.totalorder %s42_s0, %s52_s1  ;;  %p58_p2 = scmp.lt.s32.totalorder %s52_s1, %s52_s1 }
   0x7   :  { %p59_p3 = por %p58_p2, %p57_p1 }
   0x8   :  { %28 = vperm.xlu0 %51, %v25_v2  }
   0x9   :  { %p60_p4 = pnand %p59_p3, %p53_p0 }
  0x83   :  { %v21_v3 = vpop.permute.xlu0 %20 }
  0x84   :  { %v23_v6 = vmul.f32 %v21_v3, %v15_v4  ;;  %v24_v7 = vmul.f32 %v21_v3, %v16_v5 }
  0x87   :  { %v29_v8 = vpop.permute.xlu0 %28 }
  0x88   :  { %v31_v9 = vadd.f32 %v29_v8, %v23_v6  ;;  %v32_v10 = vadd.f32 %v29_v8, %v24_v7 }
  0x8a   :  { %33 = vst [vmem:[#allocation2] sm:$0xff] %v31_v9  ;;  %34 = vst [vmem:[#allocation2 + $0x8] sm:$0xff] %v32_v10 }
  0x8b   :  { %63 = shalt.err (!%p60_p4)
}
  0x8c   :  { %s64_s2 = scalar_lea.hbm %s125_s3, 256 }
  0x8d   :  { %p65_p5 = scmp.ne.s32.totalorder %s125_s3, %s64_s2  ;;  %p68_p6 = scmp.lt.u32.totalorder %s64_s2, %s125_s3 }
  0x8f   :  { %p70_p7 = pnand %p68_p6, %p65_p5 }
  0x91   :  { %73 = shalt.err (!%p70_p7)
}
  0x92   :  { %44 = dma.vmem_to_hbm [thread:$0]  %s42_s0, 256, %s125_s3, [#allocation3]  }
  0x93   :  { %74 = dma.done.wait [#allocation3], 256  }
  0x94   :  { %75 = vsyncadd [#allocation3], 4294967040 }
  0x95   :  { %48 = vsyncpa [#allocation3], 1 }

</bundles_post_ra>
